<compile_context>
chip_gen: v5e
topology: v5e:2x2
jax: 0.10.0
libtpu: 0.0.40
codegen_flags: <defaults>
</compile_context>

<pallas_src>
import functools

import jax
import jax.numpy as jnp
from jax import lax
from jax.experimental import pallas as pl
from jax.experimental.pallas import tpu as pltpu


def _round_up(x, m):
    return ((x + m - 1) // m) * m


def actor_kernel(x_ref, w1_ref, b1_ref, wh_ref, bh_ref, out_ref, *, half):
    # fc1 + relu6  (MXU matmul + VPU clamp)
    h = jnp.dot(x_ref[...], w1_ref[...], preferred_element_type=jnp.float32)
    h = jnp.clip(h + b1_ref[...], 0.0, 6.0)                     # relu6

    # fused heads: single MXU matmul over the lane-padded [H, 2*half] slab
    z = jnp.dot(h, wh_ref[...], preferred_element_type=jnp.float32) + bh_ref[...]

    # mean = 2*tanh(z), std = softplus(z) (stable form); both go to the EUP
    # slot which is otherwise idle.  Select per-lane, store one dense slab.
    mean_full = 2.0 * jnp.tanh(z)
    std_full = jnp.maximum(z, 0.0) + jnp.log1p(jnp.exp(-jnp.abs(z)))
    lane = lax.broadcasted_iota(jnp.int32, z.shape, 1)
    out_ref[...] = jnp.where(lane < half, mean_full, std_full)


def pack_heads(wm, bm, ws, bs):
    """Fuse the two head Linears into one lane-padded weight/bias slab.

    mean weights occupy lanes [0, n_out), std weights occupy lanes
    [half, half + n_out), where half is a multiple of 64 so the total lane
    width (2*half) is a multiple of 128 (dense, unmasked stores)."""
    H, n_out = wm.shape
    half = _round_up(n_out, 64)
    W = 2 * half
    w_heads = jnp.zeros((H, W), jnp.float32)
    w_heads = w_heads.at[:, :n_out].set(wm)
    w_heads = w_heads.at[:, half:half + n_out].set(ws)
    b_heads = jnp.zeros((1, W), jnp.float32)
    b_heads = b_heads.at[:, :n_out].set(bm)
    b_heads = b_heads.at[:, half:half + n_out].set(bs)
    return w_heads, b_heads, half


def actor_forward(x, w1, b1, w_heads, b_heads, n_out, half, *, tb=256):
    B, n_in = x.shape
    H = w1.shape[1]
    W = w_heads.shape[1]

    # Batch tiling: big tiles amortize the ~0.35 us/step floor; weights stay
    # resident in VMEM across steps.  Pad batch to a tile multiple.
    tb_eff = min(tb, _round_up(B, 8))
    B_pad = _round_up(B, tb_eff)
    if B_pad != B:
        x = jnp.pad(x, ((0, B_pad - B), (0, 0)))
    grid = (B_pad // tb_eff,)

    out = pl.pallas_call(
        functools.partial(actor_kernel, half=half),
        out_shape=jax.ShapeDtypeStruct((B_pad, W), jnp.float32),
        grid=grid,
        in_specs=[
            pl.BlockSpec((tb_eff, n_in), lambda i: (i, 0)),   # x: blocked on batch
            pl.BlockSpec((n_in, H), lambda i: (0, 0)),        # w1: resident
            pl.BlockSpec((1, H), lambda i: (0, 0)),           # b1: resident
            pl.BlockSpec((H, W), lambda i: (0, 0)),           # fused head weights
            pl.BlockSpec((1, W), lambda i: (0, 0)),           # fused head bias
        ],
        out_specs=pl.BlockSpec((tb_eff, W), lambda i: (i, 0)),
        compiler_params=pltpu.CompilerParams(
            dimension_semantics=("parallel",)),               # megacore on v7x
    )(x, w1, b1, w_heads, b_heads)

    mean = out[:B, :n_out]
    std = out[:B, half:half + n_out]
    return mean, std


def init_params(key, n_in, n_out, n_hidden):
    """Deterministic synthetic init mirroring initialize_weights():
       Linear weights ~ N(0, 0.1); biases ~ U(-1/sqrt(fan_in), 1/sqrt(fan_in))."""
    k = jax.random.split(key, 6)
    w1 = 0.1 * jax.random.normal(k[0], (n_in, n_hidden), jnp.float32)
    wm = 0.1 * jax.random.normal(k[1], (n_hidden, n_out), jnp.float32)
    ws = 0.1 * jax.random.normal(k[2], (n_hidden, n_out), jnp.float32)
    b1 = jax.random.uniform(k[3], (1, n_hidden), jnp.float32,
                            -1.0 / jnp.sqrt(n_in), 1.0 / jnp.sqrt(n_in))
    bm = jax.random.uniform(k[4], (1, n_out), jnp.float32,
                            -1.0 / jnp.sqrt(n_hidden), 1.0 / jnp.sqrt(n_hidden))
    bs = jax.random.uniform(k[5], (1, n_out), jnp.float32,
                            -1.0 / jnp.sqrt(n_hidden), 1.0 / jnp.sqrt(n_hidden))
    return w1, b1, wm, bm, ws, bs


if __name__ == "__main__":
    B, N_in, N_HIDDEN, N_out = 8, 16, 128, 8

    key = jax.random.PRNGKey(0)
    kx, kp = jax.random.split(key)
    x = jax.random.normal(kx, (B, N_in), jnp.float32)
    w1, b1, wm, bm, ws, bs = init_params(kp, N_in, N_out, N_HIDDEN)

    # One-time host-side packing of the fused head slab (outside the hot loop).
    w_heads, b_heads, half = pack_heads(wm, bm, ws, bs)

    fwd = jax.jit(lambda xx: actor_forward(xx, w1, b1, w_heads, b_heads,
                                           N_out, half))
    mean, std = fwd(x)
    jax.block_until_ready((mean, std))

    # reference check in plain JAX
    h_ref = jnp.clip(x @ w1 + b1, 0.0, 6.0)
    mean_ref = 2.0 * jnp.tanh(h_ref @ wm + bm)
    std_ref = jax.nn.softplus(h_ref @ ws + bs)
    assert mean.shape == (B, N_out) and std.shape == (B, N_out)
    assert jnp.allclose(mean, mean_ref, atol=1e-5), "mean mismatch"
    assert jnp.allclose(std, std_ref, atol=1e-5), "std mismatch"
    assert bool(jnp.all(std > 0.0)), "softplus output must be positive"

    # TODO(synk): choose_action() (Normal sampling + log_prob) is left in host
    # JAX; it could be fused in-kernel via pltpu.prng_seed/prng_random_bits as
    # a follow-up, but it is stochastic glue rather than the forward hot path.
    print("KERNEL_OK")
</pallas_src>

<mosaic_0001>
module attributes {stable_mosaic.version = 11 : i64} {
  func.func @actor_kernel(%arg0: i32, %arg1: memref<8x16xf32, #tpu.memory_space<vmem>>, %arg2: memref<16x128xf32, #tpu.memory_space<vmem>>, %arg3: memref<1x128xf32, #tpu.memory_space<vmem>>, %arg4: memref<128x128xf32, #tpu.memory_space<vmem>>, %arg5: memref<1x128xf32, #tpu.memory_space<vmem>>, %arg6: memref<8x128xf32, #tpu.memory_space<vmem>>) attributes {dimension_semantics = [#tpu.dimension_semantics<parallel>], iteration_bounds = array<i64: 1>, scalar_prefetch = 0 : i64, scratch_operands = 0 : i64, tpu.core_type = #tpu.core_type<tc>, window_params = [{transform_indices = @transform_0, window_bounds = array<i64: 8, 16>}, {pipeline_mode = #tpu.pipeline_mode<synchronous>, transform_indices = @transform_1, window_bounds = array<i64: 16, 128>}, {pipeline_mode = #tpu.pipeline_mode<synchronous>, transform_indices = @transform_2, window_bounds = array<i64: 1, 128>}, {pipeline_mode = #tpu.pipeline_mode<synchronous>, transform_indices = @transform_3, window_bounds = array<i64: 128, 128>}, {pipeline_mode = #tpu.pipeline_mode<synchronous>, transform_indices = @transform_4, window_bounds = array<i64: 1, 128>}, {transform_indices = @transform_5, window_bounds = array<i64: 8, 128>}]} {
    %c0 = arith.constant 0 : index
    %c0_0 = arith.constant 0 : index
    %0 = vector.load %arg1[%c0, %c0_0] : memref<8x16xf32, #tpu.memory_space<vmem>>, vector<8x16xf32>
    %c0_1 = arith.constant 0 : index
    %c0_2 = arith.constant 0 : index
    %1 = vector.load %arg2[%c0_1, %c0_2] : memref<16x128xf32, #tpu.memory_space<vmem>>, vector<16x128xf32>
    %cst = arith.constant dense<0.000000e+00> : vector<8x128xf32>
    %2 = tpu.matmul %0, %1, %cst {dimension_numbers = #tpu.dot_dimension_numbers<[1], [0], [0], [1], [0, 0, 1, 1], [], []>} : vector<8x16xf32>, vector<16x128xf32>, vector<8x128xf32> -> vector<8x128xf32>
    %c0_3 = arith.constant 0 : index
    %c0_4 = arith.constant 0 : index
    %3 = vector.load %arg3[%c0_3, %c0_4] : memref<1x128xf32, #tpu.memory_space<vmem>>, vector<1x128xf32>
    %4 = vector.broadcast %3 : vector<1x128xf32> to vector<8x128xf32>
    %5 = arith.addf %2, %4 : vector<8x128xf32>
    %cst_5 = arith.constant 0.000000e+00 : f32
    %cst_6 = arith.constant 6.000000e+00 : f32
    %6 = vector.broadcast %cst_5 : f32 to vector<8x128xf32>
    %7 = arith.maximumf %6, %5 : vector<8x128xf32>
    %8 = vector.broadcast %cst_6 : f32 to vector<8x128xf32>
    %9 = arith.minimumf %8, %7 : vector<8x128xf32>
    %c0_7 = arith.constant 0 : index
    %c0_8 = arith.constant 0 : index
    %10 = vector.load %arg4[%c0_7, %c0_8] : memref<128x128xf32, #tpu.memory_space<vmem>>, vector<128x128xf32>
    %cst_9 = arith.constant dense<0.000000e+00> : vector<8x128xf32>
    %11 = tpu.matmul %9, %10, %cst_9 {dimension_numbers = #tpu.dot_dimension_numbers<[1], [0], [0], [1], [0, 0, 1, 1], [], []>} : vector<8x128xf32>, vector<128x128xf32>, vector<8x128xf32> -> vector<8x128xf32>
    %c0_10 = arith.constant 0 : index
    %c0_11 = arith.constant 0 : index
    %12 = vector.load %arg5[%c0_10, %c0_11] : memref<1x128xf32, #tpu.memory_space<vmem>>, vector<1x128xf32>
    %13 = vector.broadcast %12 : vector<1x128xf32> to vector<8x128xf32>
    %14 = arith.addf %11, %13 : vector<8x128xf32>
    %15 = math.tanh %14 : vector<8x128xf32>
    %cst_12 = arith.constant 2.000000e+00 : f32
    %16 = vector.broadcast %cst_12 : f32 to vector<8x128xf32>
    %17 = arith.mulf %16, %15 : vector<8x128xf32>
    %cst_13 = arith.constant 0.000000e+00 : f32
    %18 = vector.broadcast %cst_13 : f32 to vector<8x128xf32>
    %19 = arith.maximumf %14, %18 : vector<8x128xf32>
    %20 = math.absf %14 : vector<8x128xf32>
    %cst_14 = arith.constant 0.000000e+00 : f32
    %21 = vector.broadcast %cst_14 : f32 to vector<8x128xf32>
    %22 = arith.subf %21, %20 : vector<8x128xf32>
    %23 = math.exp %22 : vector<8x128xf32>
    %24 = math.log1p %23 : vector<8x128xf32>
    %25 = arith.addf %19, %24 : vector<8x128xf32>
    %26 = tpu.iota {dimensions = array<i32: 1>} : vector<8x128xi32>
    %c64_i32 = arith.constant 64 : i32
    %27 = vector.broadcast %c64_i32 : i32 to vector<8x128xi32>
    %28 = arith.cmpi slt, %26, %27 : vector<8x128xi32>
    %29 = arith.select %28, %17, %25 : vector<8x128xi1>, vector<8x128xf32>
    %c0_15 = arith.constant 0 : index
    %c0_16 = arith.constant 0 : index
    %30 = vector.load %arg6[%c0_15, %c0_16] : memref<8x128xf32, #tpu.memory_space<vmem>>, vector<8x128xf32>
    tpu.vector_store %arg6[%c0_15, %c0_16], %29 {strides = array<i32>} : memref<8x128xf32, #tpu.memory_space<vmem>>, vector<8x128xf32>,
    return
  }
  func.func @transform_0(%arg0: i32) -> (i32, i32) {
    %c0_i32 = arith.constant 0 : i32
    %c0_i32_0 = arith.constant 0 : i32
    return %arg0, %c0_i32 : i32, i32
  }
  func.func @transform_1(%arg0: i32) -> (i32, i32) {
    %c0_i32 = arith.constant 0 : i32
    %c0_i32_0 = arith.constant 0 : i32
    %c0_i32_1 = arith.constant 0 : i32
    return %c0_i32, %c0_i32_0 : i32, i32
  }
  func.func @transform_2(%arg0: i32) -> (i32, i32) {
    %c0_i32 = arith.constant 0 : i32
    %c0_i32_0 = arith.constant 0 : i32
    %c0_i32_1 = arith.constant 0 : i32
    return %c0_i32, %c0_i32_0 : i32, i32
  }
  func.func @transform_3(%arg0: i32) -> (i32, i32) {
    %c0_i32 = arith.constant 0 : i32
    %c0_i32_0 = arith.constant 0 : i32
    %c0_i32_1 = arith.constant 0 : i32
    return %c0_i32, %c0_i32_0 : i32, i32
  }
  func.func @transform_4(%arg0: i32) -> (i32, i32) {
    %c0_i32 = arith.constant 0 : i32
    %c0_i32_0 = arith.constant 0 : i32
    %c0_i32_1 = arith.constant 0 : i32
    return %c0_i32, %c0_i32_0 : i32, i32
  }
  func.func @transform_5(%arg0: i32) -> (i32, i32) {
    %c0_i32 = arith.constant 0 : i32
    %c0_i32_0 = arith.constant 0 : i32
    return %arg0, %c0_i32 : i32, i32
  }
}

</mosaic_0001>

<bundles_post_ra>
// kernel: _lambda_.1
= control target key start
LH: loop header
LB: loop body
LE: loop exit
PB: predicated region body
PF: predicated region fallthrough
CT: control target
= control target key end

     0   :  { %10 = vsyncpa [#allocation3], 0  ;;  %s352_s0 = inlined_call_operand.hbm [shape: f32[8,16], index: 0, kind: input, shape index: {}]   ;;  %s353_s1 = inlined_call_operand.hbm [shape: f32[16,128], index: 1, kind: input, shape index: {}]   ;;  %s354_s2 = inlined_call_operand.hbm [shape: f32[1,128], index: 2, kind: input, shape index: {}]   ;;  %s355_s3 = inlined_call_operand.hbm [shape: f32[128,128], index: 3, kind: input, shape index: {}]   ;;  %s356_s4 = inlined_call_operand.vmem [shape: f32[1,128], index: 4, kind: input, shape index: {}]   ;;  %s357_s5 = inlined_call_operand.vmem [shape: f32[8,128], index: 5, kind: output, shape index: {}]  }
   0x1   :  { %11 = vsyncpa [#allocation5], 0  ;;  %s28_s20 = sshll.u32 %s353_s1, 4  ;;  %s29_s20 = int_to_ptr.hbm [resolvable:$true] %s28_s20 }
   0x2   :  { %12 = vsyncpa [#allocation8], 0  ;;  %s298_s21 = smov [#allocation4]   ;;  %s18_s25 = sshll.u32 %s352_s0, 4  ;;  %s19_s25 = int_to_ptr.hbm [resolvable:$true] %s18_s25 }
   0x3   :  { %s30_s22 = sshll.u32 %s298_s21, 4  ;;  %s299_s26 = smov 128   ;;  %s31_s22 = int_to_ptr.vmem [resolvable:$true] %s30_s22 }
   0x4   :  { %s300_s27 = smov 8   ;;  %s301_s28 = smov [#allocation2]  }
   0x5   :  { %36 = dma.hbm_to_vmem [thread:$0]  %s29_s20, 256, %s31_s22, [#allocation5], %s299_s26, %s299_s26, %s300_s27  }
   0x6   :  { %s20_s29 = sshll.u32 %s301_s28, 4  ;;  %s42_s7 = sshll.u32 %s354_s2, 4  ;;  %s21_s29 = int_to_ptr.vmem [resolvable:$true] %s20_s29  ;;  %s43_s7 = int_to_ptr.hbm [resolvable:$true] %s42_s7 }
   0x7   :  { %23 = dma.hbm_to_vmem [thread:$0]  %s19_s25, 128, %s21_s29, [#allocation3]  }
   0x8   :  { %s52_s9 = sshll.u32 %s355_s3, 4  ;;  %s302_s10 = smov [#allocation6]   ;;  %s53_s9 = int_to_ptr.hbm [resolvable:$true] %s52_s9 }
   0x9   :  { %s44_s11 = sshll.u32 %s302_s10, 4  ;;  %s303_s0 = smov [#allocation7]   ;;  %s45_s11 = int_to_ptr.vmem [resolvable:$true] %s44_s11 }
   0xa   :  { %47 = dma.hbm_to_vmem [thread:$0]  %s43_s7, 16, %s45_s11, [#allocation5]  }
   0xb   :  { %s54_s12 = sshll.u32 %s303_s0, 4  ;;  %s55_s12 = int_to_ptr.vmem [resolvable:$true] %s54_s12 }
   0xc   :  { %60 = dma.hbm_to_vmem [thread:$0]  %s53_s9, 2048, %s55_s12, [#allocation8], %s299_s26, %s299_s26, %s300_s27  }
   0xd   :  { %292 = dma.done.wait [#allocation3], 128  }
   0xe   :  { %293 = vsyncadd [#allocation3], 4294967168 }
   0xf   :  { %294 = dma.done.wait [#allocation5], 272  }
  0x10   :  { %295 = vsyncadd [#allocation5], 4294967024 }
  0x11   :  { %296 = dma.done.wait [#allocation8], 2048  }
  0x12   :  { %297 = vsyncadd [#allocation8], 4294965248  ;;  %v81_v0 = vld [vmem:[#allocation4 + $0x8] sm:$0xff]  ;;  %v80_v1 = vld [vmem:[#allocation4] sm:$0xff]  ;;  %vm86_vm0 = vcmask 130048   ;;  %v169_v33 = vlaneseq }
  0x13   :  { %104 = vmatpush.msra.mxu0 %v81_v0  ;;  %v79_v2 = vld [vmem:[#allocation2] sm:$0xff]  ;;  %v127_v3 = vld [vmem:[#allocation7 + $0x78] sm:$0xff]  ;;  %v126_v4 = vld [vmem:[#allocation7 + $0x70] sm:$0xff] }
  0x14   :  { %132 = vmatpush.msra.mxu1 %v127_v3  ;;  %v125_v5 = vld [vmem:[#allocation7 + $0x68] sm:$0xff]  ;;  %v124_v6 = vld [vmem:[#allocation7 + $0x60] sm:$0xff]  ;;  %v123_v7 = vld [vmem:[#allocation7 + $0x58] sm:$0xff]  ;;  %v170_v36 = vand.u32 127, %v169_v33 }
  0x15   :  { %105 = vmatpush.msra.mxu0 %v80_v1  ;;  %v122_v8 = vld [vmem:[#allocation7 + $0x50] sm:$0xff]  ;;  %v121_v9 = vld [vmem:[#allocation7 + $0x48] sm:$0xff]  ;;  %v120_v10 = vld [vmem:[#allocation7 + $0x40] sm:$0xff] }
  0x16   :  { %181 = vmatmul.msk.f32.vlgmr.msra.gmra.mxu0 %vm86_vm0, %v79_v2  ;;  %133 = vmatpush.msra.mxu1 %v126_v4  ;;  %v119_v11 = vld [vmem:[#allocation7 + $0x38] sm:$0xff]  ;;  %v118_v12 = vld [vmem:[#allocation7 + $0x30] sm:$0xff]  ;;  %v117_v13 = vld [vmem:[#allocation7 + $0x28] sm:$0xff]  ;;  %vm171_vm2 = vcmp.lt.s32.totalorder %v170_v36, 64 }
  0x17   :  { %v116_v14 = vld [vmem:[#allocation7 + $0x20] sm:$0xff]  ;;  %v115_v15 = vld [vmem:[#allocation7 + $0x18] sm:$0xff]  ;;  %v114_v16 = vld [vmem:[#allocation7 + $0x10] sm:$0xff] }
  0x18   :  { %134 = vmatpush.msra.mxu1 %v125_v5  ;;  %v113_v17 = vld [vmem:[#allocation7 + $0x8] sm:$0xff]  ;;  %v112_v18 = vld [vmem:[#allocation7] sm:$0xff]  ;;  %v188_v19 = vld [vmem:[#allocation6] ss:$0 sm:$0xff] }
  0x19   :  { %v189_v24 = vld [vmem:[%s356_s4] ss:$0 sm:$0xff] }
  0x1a   :  { %135 = vmatpush.msra.mxu1 %v124_v6 }
  0x1c   :  { %136 = vmatpush.msra.mxu1 %v123_v7 }
  0x1e   :  { %137 = vmatpush.msra.mxu1 %v122_v8 }
  0x20   :  { %138 = vmatpush.msra.mxu1 %v121_v9 }
  0x22   :  { %139 = vmatpush.msra.mxu1 %v120_v10 }
  0x24   :  { %140 = vmatpush.msra.mxu1 %v119_v11 }
  0x26   :  { %141 = vmatpush.msra.mxu1 %v118_v12 }
  0x28   :  { %142 = vmatpush.msra.mxu1 %v117_v13 }
  0x2a   :  { %143 = vmatpush.msra.mxu1 %v116_v14 }
  0x2c   :  { %144 = vmatpush.msra.mxu1 %v115_v15 }
  0x2e   :  { %145 = vmatpush.msra.mxu1 %v114_v16 }
  0x30   :  { %146 = vmatpush.msra.mxu1 %v113_v17 }
  0x32   :  { %147 = vmatpush.msra.mxu1 %v112_v18 }
  0x93   :  { %v107_v20 = vpop.f32.mrf.mxu0 }
  0x94   :  { %v108_v21 = vadd.f32 %v188_v19, %v107_v20 }
  0x96   :  { %v110_v22 = vmax.f32 %v108_v21, 0.0 }
  0x98   :  { %v111_v23 = vmin.f32 %v110_v22, 6.0 }
  0x9a   :  { %148 = vmatmul.f32.vlgmr.msra.gmra.mxu1 %v111_v23 }
 0x117   :  { %v149_v25 = vpop.f32.mrf.mxu1 }
 0x118   :  { %v150_v26 = vadd.f32 %v189_v24, %v149_v25 }
 0x11a   :  { %v155_v27 = vand.u32 2147483647, %v150_v26  ;;  %v154_v41 = vmax.f32 %v150_v26, 0.0 }
 0x11c   :  { %v156_v28 = vsub.f32 0.0, %v155_v27 }
 0x11e   :  { %v157_v29 = vmul.f32 1.442695, %v156_v28 }
 0x120   :  { %190 = vpow2.f32 %v157_v29 }
 0x126   :  { %v191_v30 = vpop.eup %190 }
 0x127   :  { %v159_v31 = vadd.f32 1.0, %v191_v30  ;;  %v162_v32 = vmul.f32 -0.5, %v191_v30  ;;  %v165_v35 = vand.u32 2147483647, %v191_v30 }
 0x129   :  { %192 = vlog2.f32 %v159_v31  ;;  %v163_v34 = vadd.f32 1.0, %v162_v32  ;;  %vm166_vm1 = vcmp.lt.f32.partialorder %v165_v35, 0.0004427343 }
 0x12a   :  { %194 = vtanh.f32 %v150_v26 }
 0x12b   :  { %v164_v40 = vmul.f32 %v191_v30, %v163_v34 }
 0x12f   :  { %v193_v37 = vpop.eup %192 }
 0x130   :  { %v195_v38 = vpop.eup %194  ;;  %v161_v39 = vmul.f32 0.6931472, %v193_v37 }
 0x131   :  { %v153_v43 = vmul.f32 2.0, %v195_v38 }
 0x132   :  { %v167_v42 = vsel %vm166_vm1, %v164_v40, %v161_v39 }
 0x133   :  { %v168_v44 = vadd.f32 %v167_v42, %v154_v41 }
 0x135   :  { %v172_v45 = vsel %vm171_vm2, %v153_v43, %v168_v44 }
 0x136   :  { %173 = vst [vmem:[%s357_s5] sm:$0xff] %v172_v45 }
 0x137   :  { %178 = vsyncpa [#allocation3], 1 }
 0x138   :  { %179 = vsyncpa [#allocation5], 1 }
 0x139   :  { %180 = vsyncpa [#allocation8], 1 }

</bundles_post_ra>
